<compile_context>
chip_gen: v7x
topology: tpu7x:2x2x1
jax: 0.10.0
libtpu: 0.0.40
codegen_flags: <defaults>
</compile_context>

<pallas_src>
import jax
import jax.numpy as jnp
from jax.experimental import pallas as pl
from jax.experimental.pallas import tpu as pltpu


def _round_up(n, m):
    return ((n + m - 1) // m) * m


def qnetwork_kernel(x_ref,
                    w1_ref, b1_ref,
                    w2_ref, b2_ref,
                    w3_ref, b3_ref,
                    w4_ref, b4_ref,
                    out_ref):
    """Fused fc1->relu->fc2->relu->fc3->relu->out for one batch tile.

    x_ref: (TM, state_size) f32 -> cast to bf16 for the MXU.
    Weights: bf16.  Accumulation + bias add + ReLU: f32.
    out_ref: (TM, action_size) f32.
    """
    x = x_ref[...].astype(jnp.bfloat16)

    # fc1 + ReLU  (K = state_size, handled by Mosaic's internal padding)
    h = jnp.dot(x, w1_ref[...], preferred_element_type=jnp.float32) + b1_ref[...]
    h = jnp.maximum(h, 0.0)

    # fc2 + ReLU
    h = jnp.dot(h.astype(jnp.bfloat16), w2_ref[...],
                preferred_element_type=jnp.float32) + b2_ref[...]
    h = jnp.maximum(h, 0.0)

    # fc3 + ReLU
    h = jnp.dot(h.astype(jnp.bfloat16), w3_ref[...],
                preferred_element_type=jnp.float32) + b3_ref[...]
    h = jnp.maximum(h, 0.0)

    # out (no activation); N = action_size, masked store is fine (review opt. 2a)
    y = jnp.dot(h.astype(jnp.bfloat16), w4_ref[...],
                preferred_element_type=jnp.float32) + b4_ref[...]
    out_ref[...] = y.astype(out_ref.dtype)


def prepare_qnetwork_params(params):
    """Cast once: bf16 weights at their TRUE shapes, f32 (1, fan_out) biases."""
    return tuple(
        (w.astype(jnp.bfloat16), b.astype(jnp.float32).reshape(1, -1))
        for (w, b) in params
    )


def _choose_tm(batch, tm_max):
    """Batch-tile size: multiple of 16 (bf16 packing); >=2 grid steps for
    mid/large batches so the 'parallel' axis shards across v7x's two TCs."""
    if batch <= 64:
        # single tile; TM == full batch dim is always a legal block dim
        return batch
    return min(tm_max, _round_up(pl.cdiv(batch, 2), 16))


def qnetwork_forward(x, prepared, *, tm_max=2048):
    """x: (B, state_size) f32.  Returns (B, action_size) f32 Q-values."""
    (w1, b1), (w2, b2), (w3, b3), (w4, b4) = prepared
    B, S = x.shape
    A = w4.shape[1]

    TM = _choose_tm(B, tm_max)
    grid = (pl.cdiv(B, TM),)      # boundary blocks are masked by Pallas

    def resident(a):
        nd = a.ndim
        # constant index_map -> stays VMEM-resident across grid iterations
        return pl.BlockSpec(a.shape, lambda i: (0,) * nd)

    weight_bytes = sum(w.size * 2 + b.size * 4
                       for (w, b) in ((w1, b1), (w2, b2), (w3, b3), (w4, b4)))
    cost = pl.CostEstimate(
        flops=2 * B * (S * 256 + 256 * 256 + 256 * 128 + 128 * A),
        transcendentals=0,
        bytes_accessed=B * S * 4 + B * A * 4 + weight_bytes,
    )

    out = pl.pallas_call(
        qnetwork_kernel,
        out_shape=jax.ShapeDtypeStruct((B, A), jnp.float32),
        grid_spec=pltpu.PrefetchScalarGridSpec(
            num_scalar_prefetch=0,
            grid=grid,
            in_specs=[
                pl.BlockSpec((TM, S), lambda i: (i, 0)),   # x: tiled over batch
                resident(w1), resident(b1),                # weights/biases stay
                resident(w2), resident(b2),                # VMEM-resident across
                resident(w3), resident(b3),                # all grid iterations
                resident(w4), resident(b4),
            ],
            out_specs=pl.BlockSpec((TM, A), lambda i: (i, 0)),
        ),
        compiler_params=pltpu.CompilerParams(
            dimension_semantics=("parallel",),             # megacore on v7x
            vmem_limit_bytes=32 * 1024 * 1024,             # v5e headroom at big TM
        ),
        cost_estimate=cost,
    )(x, w1, b1, w2, b2, w3, b3, w4, b4)

    return out


def xavier_uniform(key, fan_in, fan_out, dtype=jnp.float32):
    # matches nn.init.xavier_uniform_ (gain=1)
    limit = jnp.sqrt(6.0 / (fan_in + fan_out))
    return jax.random.uniform(key, (fan_in, fan_out), dtype, -limit, limit)


def init_qnetwork_params(key, state_size, action_size):
    """Synthetic init mirroring QNetwork.__init__ shapes.

    Weights: xavier_uniform in (in, out) layout (so x @ W == PyTorch x @ W.T).
    Biases: PyTorch Linear default U(-1/sqrt(fan_in), 1/sqrt(fan_in))."""
    sizes = [(state_size, 256), (256, 256), (256, 128), (128, action_size)]
    params = []
    for (fan_in, fan_out) in sizes:
        key, kw, kb = jax.random.split(key, 3)
        w = xavier_uniform(kw, fan_in, fan_out)
        bound = 1.0 / jnp.sqrt(float(fan_in))
        b = jax.random.uniform(kb, (fan_out,), jnp.float32, -bound, bound)
        params.append((w, b))
    return params


if __name__ == "__main__":
    key = jax.random.PRNGKey(0)
    k_params, k_x = jax.random.split(key)

    batch = 8
    state_size = 37    # Banana-navigation state dimension
    action_size = 4

    params = init_qnetwork_params(k_params, state_size, action_size)
    x = jax.random.normal(k_x, (batch, state_size), dtype=jnp.float32)

    prepared = prepare_qnetwork_params(params)
    q_values = qnetwork_forward(x, prepared)
    jax.block_until_ready(q_values)
    assert q_values.shape == (batch, action_size)

    # Reference 1: same math as the kernel (bf16 weights/MXU inputs, f32 accum) — tight.
    def ref_bf16(x, params):
        h = x
        for i, (w, b) in enumerate(params):
            h = jnp.dot(h.astype(jnp.bfloat16), w.astype(jnp.bfloat16),
                        preferred_element_type=jnp.float32) + b
            if i < len(params) - 1:
                h = jnp.maximum(h, 0.0)
        return h

    # Reference 2: full-f32 forward (PyTorch semantics) — loose, covers bf16 rounding.
    def ref_f32(x, params):
        h = x
        for i, (w, b) in enumerate(params):
            h = h @ w + b
            if i < len(params) - 1:
                h = jnp.maximum(h, 0.0)
        return h

    ref_bf = ref_bf16(x, params)
    ref_fp = ref_f32(x, params)
    assert jnp.allclose(q_values, ref_bf, atol=1e-3, rtol=1e-3), "mismatch vs bf16 reference"
    assert jnp.allclose(q_values, ref_fp, atol=5e-2, rtol=5e-2), "mismatch vs f32 reference"

    print("KERNEL_OK")
</pallas_src>

<mosaic_0001>
module attributes {stable_mosaic.version = 11 : i64} {
  func.func @qnetwork_kernel(%arg0: i32, %arg1: memref<8x37xf32, #tpu.memory_space<vmem>>, %arg2: memref<37x256xbf16, #tpu.memory_space<vmem>>, %arg3: memref<1x256xf32, #tpu.memory_space<vmem>>, %arg4: memref<256x256xbf16, #tpu.memory_space<vmem>>, %arg5: memref<1x256xf32, #tpu.memory_space<vmem>>, %arg6: memref<256x128xbf16, #tpu.memory_space<vmem>>, %arg7: memref<1x128xf32, #tpu.memory_space<vmem>>, %arg8: memref<128x4xbf16, #tpu.memory_space<vmem>>, %arg9: memref<1x4xf32, #tpu.memory_space<vmem>>, %arg10: memref<8x4xf32, #tpu.memory_space<vmem>>) attributes {dimension_semantics = [#tpu.dimension_semantics<parallel>], iteration_bounds = array<i64: 1>, scalar_prefetch = 0 : i64, scratch_operands = 0 : i64, tpu.core_type = #tpu.core_type<tc>, window_params = [{transform_indices = @transform_0, window_bounds = array<i64: 8, 37>}, {pipeline_mode = #tpu.pipeline_mode<synchronous>, transform_indices = @transform_1, window_bounds = array<i64: 37, 256>}, {pipeline_mode = #tpu.pipeline_mode<synchronous>, transform_indices = @transform_2, window_bounds = array<i64: 1, 256>}, {pipeline_mode = #tpu.pipeline_mode<synchronous>, transform_indices = @transform_3, window_bounds = array<i64: 256, 256>}, {pipeline_mode = #tpu.pipeline_mode<synchronous>, transform_indices = @transform_4, window_bounds = array<i64: 1, 256>}, {pipeline_mode = #tpu.pipeline_mode<synchronous>, transform_indices = @transform_5, window_bounds = array<i64: 256, 128>}, {pipeline_mode = #tpu.pipeline_mode<synchronous>, transform_indices = @transform_6, window_bounds = array<i64: 1, 128>}, {pipeline_mode = #tpu.pipeline_mode<synchronous>, transform_indices = @transform_7, window_bounds = array<i64: 128, 4>}, {pipeline_mode = #tpu.pipeline_mode<synchronous>, transform_indices = @transform_8, window_bounds = array<i64: 1, 4>}, {transform_indices = @transform_9, window_bounds = array<i64: 8, 4>}]} {
    %c0 = arith.constant 0 : index
    %c0_0 = arith.constant 0 : index
    %0 = vector.load %arg1[%c0, %c0_0] : memref<8x37xf32, #tpu.memory_space<vmem>>, vector<8x37xf32>
    %1 = arith.truncf %0 : vector<8x37xf32> to vector<8x37xbf16>
    %c0_1 = arith.constant 0 : index
    %c0_2 = arith.constant 0 : index
    %2 = vector.load %arg2[%c0_1, %c0_2] : memref<37x256xbf16, #tpu.memory_space<vmem>>, vector<37x256xbf16>
    %cst = arith.constant dense<0.000000e+00> : vector<8x256xf32>
    %3 = tpu.matmul %1, %2, %cst {dimension_numbers = #tpu.dot_dimension_numbers<[1], [0], [0], [1], [0, 0, 1, 1], [], []>} : vector<8x37xbf16>, vector<37x256xbf16>, vector<8x256xf32> -> vector<8x256xf32>
    %c0_3 = arith.constant 0 : index
    %c0_4 = arith.constant 0 : index
    %4 = vector.load %arg3[%c0_3, %c0_4] : memref<1x256xf32, #tpu.memory_space<vmem>>, vector<1x256xf32>
    %5 = vector.broadcast %4 : vector<1x256xf32> to vector<8x256xf32>
    %6 = arith.addf %3, %5 : vector<8x256xf32>
    %cst_5 = arith.constant 0.000000e+00 : f32
    %7 = vector.broadcast %cst_5 : f32 to vector<8x256xf32>
    %8 = arith.maximumf %6, %7 : vector<8x256xf32>
    %9 = arith.truncf %8 : vector<8x256xf32> to vector<8x256xbf16>
    %c0_6 = arith.constant 0 : index
    %c0_7 = arith.constant 0 : index
    %10 = vector.load %arg4[%c0_6, %c0_7] : memref<256x256xbf16, #tpu.memory_space<vmem>>, vector<256x256xbf16>
    %cst_8 = arith.constant dense<0.000000e+00> : vector<8x256xf32>
    %11 = tpu.matmul %9, %10, %cst_8 {dimension_numbers = #tpu.dot_dimension_numbers<[1], [0], [0], [1], [0, 0, 1, 1], [], []>} : vector<8x256xbf16>, vector<256x256xbf16>, vector<8x256xf32> -> vector<8x256xf32>
    %c0_9 = arith.constant 0 : index
    %c0_10 = arith.constant 0 : index
    %12 = vector.load %arg5[%c0_9, %c0_10] : memref<1x256xf32, #tpu.memory_space<vmem>>, vector<1x256xf32>
    %13 = vector.broadcast %12 : vector<1x256xf32> to vector<8x256xf32>
    %14 = arith.addf %11, %13 : vector<8x256xf32>
    %cst_11 = arith.constant 0.000000e+00 : f32
    %15 = vector.broadcast %cst_11 : f32 to vector<8x256xf32>
    %16 = arith.maximumf %14, %15 : vector<8x256xf32>
    %17 = arith.truncf %16 : vector<8x256xf32> to vector<8x256xbf16>
    %c0_12 = arith.constant 0 : index
    %c0_13 = arith.constant 0 : index
    %18 = vector.load %arg6[%c0_12, %c0_13] : memref<256x128xbf16, #tpu.memory_space<vmem>>, vector<256x128xbf16>
    %cst_14 = arith.constant dense<0.000000e+00> : vector<8x128xf32>
    %19 = tpu.matmul %17, %18, %cst_14 {dimension_numbers = #tpu.dot_dimension_numbers<[1], [0], [0], [1], [0, 0, 1, 1], [], []>} : vector<8x256xbf16>, vector<256x128xbf16>, vector<8x128xf32> -> vector<8x128xf32>
    %c0_15 = arith.constant 0 : index
    %c0_16 = arith.constant 0 : index
    %20 = vector.load %arg7[%c0_15, %c0_16] : memref<1x128xf32, #tpu.memory_space<vmem>>, vector<1x128xf32>
    %21 = vector.broadcast %20 : vector<1x128xf32> to vector<8x128xf32>
    %22 = arith.addf %19, %21 : vector<8x128xf32>
    %cst_17 = arith.constant 0.000000e+00 : f32
    %23 = vector.broadcast %cst_17 : f32 to vector<8x128xf32>
    %24 = arith.maximumf %22, %23 : vector<8x128xf32>
    %25 = arith.truncf %24 : vector<8x128xf32> to vector<8x128xbf16>
    %c0_18 = arith.constant 0 : index
    %c0_19 = arith.constant 0 : index
    %26 = vector.load %arg8[%c0_18, %c0_19] : memref<128x4xbf16, #tpu.memory_space<vmem>>, vector<128x4xbf16>
    %cst_20 = arith.constant dense<0.000000e+00> : vector<8x4xf32>
    %27 = tpu.matmul %25, %26, %cst_20 {dimension_numbers = #tpu.dot_dimension_numbers<[1], [0], [0], [1], [0, 0, 1, 1], [], []>} : vector<8x128xbf16>, vector<128x4xbf16>, vector<8x4xf32> -> vector<8x4xf32>
    %c0_21 = arith.constant 0 : index
    %c0_22 = arith.constant 0 : index
    %28 = vector.load %arg9[%c0_21, %c0_22] : memref<1x4xf32, #tpu.memory_space<vmem>>, vector<1x4xf32>
    %29 = vector.broadcast %28 : vector<1x4xf32> to vector<8x4xf32>
    %30 = arith.addf %27, %29 : vector<8x4xf32>
    %c0_23 = arith.constant 0 : index
    %c0_24 = arith.constant 0 : index
    %31 = vector.load %arg10[%c0_23, %c0_24] : memref<8x4xf32, #tpu.memory_space<vmem>>, vector<8x4xf32>
    tpu.vector_store %arg10[%c0_23, %c0_24], %30 {strides = array<i32>} : memref<8x4xf32, #tpu.memory_space<vmem>>, vector<8x4xf32>,
    return
  }
  func.func @transform_0(%arg0: i32) -> (i32, i32) {
    %c0_i32 = arith.constant 0 : i32
    %c0_i32_0 = arith.constant 0 : i32
    return %arg0, %c0_i32 : i32, i32
  }
  func.func @transform_1(%arg0: i32) -> (i32, i32) {
    %c0_i32 = arith.constant 0 : i32
    %c0_i32_0 = arith.constant 0 : i32
    %c0_i32_1 = arith.constant 0 : i32
    return %c0_i32, %c0_i32_0 : i32, i32
  }
  func.func @transform_2(%arg0: i32) -> (i32, i32) {
    %c0_i32 = arith.constant 0 : i32
    %c0_i32_0 = arith.constant 0 : i32
    %c0_i32_1 = arith.constant 0 : i32
    return %c0_i32, %c0_i32_0 : i32, i32
  }
  func.func @transform_3(%arg0: i32) -> (i32, i32) {
    %c0_i32 = arith.constant 0 : i32
    %c0_i32_0 = arith.constant 0 : i32
    %c0_i32_1 = arith.constant 0 : i32
    return %c0_i32, %c0_i32_0 : i32, i32
  }
  func.func @transform_4(%arg0: i32) -> (i32, i32) {
    %c0_i32 = arith.constant 0 : i32
    %c0_i32_0 = arith.constant 0 : i32
    %c0_i32_1 = arith.constant 0 : i32
    return %c0_i32, %c0_i32_0 : i32, i32
  }
  func.func @transform_5(%arg0: i32) -> (i32, i32) {
    %c0_i32 = arith.constant 0 : i32
    %c0_i32_0 = arith.constant 0 : i32
    %c0_i32_1 = arith.constant 0 : i32
    return %c0_i32, %c0_i32_0 : i32, i32
  }
  func.func @transform_6(%arg0: i32) -> (i32, i32) {
    %c0_i32 = arith.constant 0 : i32
    %c0_i32_0 = arith.constant 0 : i32
    %c0_i32_1 = arith.constant 0 : i32
    return %c0_i32, %c0_i32_0 : i32, i32
  }
  func.func @transform_7(%arg0: i32) -> (i32, i32) {
    %c0_i32 = arith.constant 0 : i32
    %c0_i32_0 = arith.constant 0 : i32
    %c0_i32_1 = arith.constant 0 : i32
    return %c0_i32, %c0_i32_0 : i32, i32
  }
  func.func @transform_8(%arg0: i32) -> (i32, i32) {
    %c0_i32 = arith.constant 0 : i32
    %c0_i32_0 = arith.constant 0 : i32
    %c0_i32_1 = arith.constant 0 : i32
    return %c0_i32, %c0_i32_0 : i32, i32
  }
  func.func @transform_9(%arg0: i32) -> (i32, i32) {
    %c0_i32 = arith.constant 0 : i32
    %c0_i32_0 = arith.constant 0 : i32
    return %arg0, %c0_i32 : i32, i32
  }
}

</mosaic_0001>

<bundles_post_ra>
// kernel: tpu_custom_call.1
= control target key start
LH: loop header
LB: loop body
LE: loop exit
PB: predicated region body
PF: predicated region fallthrough
CT: control target
= control target key end

     0   :  { %14 = vsyncpa [#allocation3], 0  ;;  %s1104_s0 = inlined_call_operand.vmem [shape: f32[8,37], index: 0, kind: input, shape index: {}]   ;;  %s1105_s1 = inlined_call_operand.vmem [shape: bf16[37,256], index: 1, kind: input, shape index: {}]   ;;  %s1106_s2 = inlined_call_operand.vmem [shape: f32[1,256], index: 2, kind: input, shape index: {}]   ;;  %s1107_s3 = inlined_call_operand.hbm [shape: bf16[256,256], index: 3, kind: input, shape index: {}]   ;;  %s1108_s4 = inlined_call_operand.vmem [shape: f32[1,256], index: 4, kind: input, shape index: {}]   ;;  %s1109_s5 = inlined_call_operand.hbm [shape: bf16[256,128], index: 5, kind: input, shape index: {}]   ;;  %s1110_s6 = inlined_call_operand.vmem [shape: f32[1,128], index: 6, kind: input, shape index: {}]   ;;  %s1111_s7 = inlined_call_operand.vmem [shape: bf16[128,4], index: 7, kind: input, shape index: {}]   ;;  %s1112_s8 = inlined_call_operand.vmem [shape: f32[1,4], index: 8, kind: input, shape index: {}]   ;;  %s1113_s9 = inlined_call_operand.vmem [shape: f32[8,4], index: 9, kind: output, shape index: {}]  }
   0x1   :  { %15 = vsyncpa [#allocation5], 0  ;;  %s963_s30 = smov [#allocation2]   ;;  %s915_s13 = scalar_lea.hbm %s1107_s3, 4096 }
   0x2   :  { %s27_s10 = sshll.u32 %s963_s30, 4  ;;  %p916_p0 = scmp.ne.s32.totalorder %s1107_s3, %s915_s13  ;;  %s28_s10 = int_to_ptr.vmem [resolvable:$true] %s27_s10 }
   0x3   :  { %p919_p1 = scmp.lt.u32.totalorder %s915_s13, %s1107_s3 }
   0x5   :  { %p921_p2 = pnand %p919_p1, %p916_p0 }
   0x7   :  { %924 = shalt.err (!%p921_p2)
}
   0x8   :  { %s925_s18 = scalar_lea.vmem %s28_s10, 4096  ;;  %p930_p4 = scmp.lt.s32.totalorder %s28_s10, %s28_s10 }
   0x9   :  { %p926_p3 = scmp.ne.s32.totalorder %s28_s10, %s925_s18  ;;  %p931_p5 = scmp.lt.s32.totalorder %s925_s18, %s925_s18 }
   0xb   :  { %p932_p6 = por %p931_p5, %p930_p4 }
   0xd   :  { %p933_p7 = pnand %p932_p6, %p926_p3 }
   0xf   :  { %936 = shalt.err (!%p933_p7)
}
  0x10   :  { %s964_s19 = smov 128   ;;  %s965_s20 = smov 8  }
  0x11   :  { %33 = dma.hbm_to_vmem [thread:$0]  %s1107_s3, 4096, %s28_s10, [#allocation3], %s964_s19, %s964_s19, %s965_s20  }
  0x12   :  { %s966_s23 = smov [#allocation4]   ;;  %s937_s27 = scalar_lea.hbm %s1109_s5, 2048 }
  0x13   :  { %s41_s24 = sshll.u32 %s966_s23, 4  ;;  %p938_p8 = scmp.ne.s32.totalorder %s1109_s5, %s937_s27  ;;  %s42_s24 = int_to_ptr.vmem [resolvable:$true] %s41_s24 }
  0x14   :  { %p941_p9 = scmp.lt.u32.totalorder %s937_s27, %s1109_s5 }
  0x16   :  { %p943_p10 = pnand %p941_p9, %p938_p8 }
  0x18   :  { %946 = shalt.err (!%p943_p10)
}
  0x19   :  { %s947_s12 = scalar_lea.vmem %s42_s24, 2048  ;;  %p952_p12 = scmp.lt.s32.totalorder %s42_s24, %s42_s24 }
  0x1a   :  { %p948_p11 = scmp.ne.s32.totalorder %s42_s24, %s947_s12  ;;  %p953_p13 = scmp.lt.s32.totalorder %s947_s12, %s947_s12 }
  0x1c   :  { %p954_p0 = por %p953_p13, %p952_p12 }
  0x1e   :  { %p955_p1 = pnand %p954_p0, %p948_p11 }
  0x20   :  { %958 = shalt.err (!%p955_p1)
}
  0x21   :  { %s967_s3 = smov 64   ;;  %s968_s10 = smov 4  }
  0x22   :  { %47 = dma.hbm_to_vmem [thread:$0]  %s1109_s5, 2048, %s42_s24, [#allocation5], %s967_s3, %s967_s3, %s968_s10  }
  0x23   :  { %959 = dma.done.wait [#allocation3], 4096  }
  0x24   :  { %960 = vsyncadd [#allocation3], 4294963200 }
  0x25   :  { %961 = dma.done.wait [#allocation5], 2048  }
  0x26   :  { %962 = vsyncadd [#allocation5], 4294965248  ;;  %v969_v0 = vmov 0   ;;  %vm109_vm0 = vcmask 1041408   ;;  %vm110_vm1 = vcmask 1042432   ;;  %v970_v1 = vmov 65535  }
  0x27   :  { %151 = vmatprep.mubr.bf16.mxu0 %v969_v0  ;;  %v111_v2 = vsel %vm109_vm0, 4294967295, %v970_v1  ;;  %v835_v3 = vld [vmem:[%s1105_s1 + $0x4] ss:$8 sps:$4 sm:$0xff]   ;;  %v837_v4 = vld [vmem:[%s1105_s1] ss:$8 sps:$4 sm:$0xff]   ;;  %vm105_vm2 = vcmask 302080   ;;  %v70_v59 = vlaneseq }
  0x28   :  { %119 = vmatprep.subr.bf16.mxu0 %v835_v3  ;;  %v838_v5 = vld [vmem:[%s1105_s1 + $0x14] ss:$8 sps:$4 sm:$0xff]   ;;  %v67_v6 = vld [vmem:[%s1105_s1 + $0x20] sm:$0x77]  ;;  %v112_v7 = vsel %vm110_vm1, %v111_v2, 0  ;;  %v893_v49 = vld [vmem:[#allocation4 + $0x48] sm:$0xff]  }
  0x29   :  { %120 = vmatpush1.bf16.msra.mxu0 %v837_v4  ;;  %v840_v8 = vld [vmem:[%s1105_s1 + $0x10] ss:$8 sps:$4 sm:$0xff]   ;;  %v714_v9 = vcombine.high %v67_v6, %v67_v6  ;;  %v713_v10 = vcombine.low %v67_v6, %v67_v6  ;;  %v843_v11 = vld [vmem:[#allocation2 + $0x4] ss:$8 sps:$4 sm:$0xff]   ;;  %v845_v12 = vld [vmem:[#allocation2] ss:$8 sps:$4 sm:$0xff]  }
  0x2a   :  { %121 = vmatprep.subr.bf16.mxu0 %v838_v5  ;;  %v846_v14 = vld [vmem:[#allocation2 + $0x14] ss:$8 sps:$4 sm:$0xff]   ;;  %v61_v15 = vld [vmem:[%s1104_s0] sm:$0xff]  ;;  %368 = vmatprep.subr.bf16.mxu1 %v843_v11  ;;  %v848_v17 = vld [vmem:[#allocation2 + $0x10] ss:$8 sps:$4 sm:$0xff]   ;;  %v71_v60 = vshrl.u32 %v70_v59, 7 }
  0x2b   :  { %v117_v13 = vand.u32 %v714_v9, %v112_v7  ;;  %v114_v16 = vand.u32 %v713_v10, %v112_v7  ;;  %369 = vmatpush1.bf16.msra.mxu1 %v845_v12  ;;  %v849_v18 = vld [vmem:[#allocation2 + $0x24] ss:$8 sps:$4 sm:$0xff]   ;;  %v62_v19 = vpack.c.bf16 %v61_v15, %v61_v15  ;;  %v851_v20 = vld [vmem:[#allocation2 + $0x20] ss:$8 sps:$4 sm:$0xff]   ;;  %v852_v21 = vld [vmem:[#allocation2 + $0x34] ss:$8 sps:$4 sm:$0xff]  }
  0x2c   :  { %370 = vmatprep.subr.bf16.mxu1 %v846_v14  ;;  %v854_v22 = vld [vmem:[#allocation2 + $0x30] ss:$8 sps:$4 sm:$0xff]   ;;  %v855_v23 = vld [vmem:[#allocation2 + $0x44] ss:$8 sps:$4 sm:$0xff]   ;;  %v857_v24 = vld [vmem:[#allocation2 + $0x40] ss:$8 sps:$4 sm:$0xff]  }
  0x2d   :  { %122 = vmatpush1.bf16.msra.mxu0 %v840_v8  ;;  %v858_v25 = vld [vmem:[#allocation2 + $0x54] ss:$8 sps:$4 sm:$0xff]   ;;  %v860_v26 = vld [vmem:[#allocation2 + $0x50] ss:$8 sps:$4 sm:$0xff]   ;;  %v861_v27 = vld [vmem:[#allocation2 + $0x64] ss:$8 sps:$4 sm:$0xff]  }
  0x2e   :  { %123 = vmatprep.subr.bf16.mxu0 %v117_v13  ;;  %v863_v28 = vld [vmem:[#allocation2 + $0x60] ss:$8 sps:$4 sm:$0xff]   ;;  %v864_v29 = vld [vmem:[#allocation2 + $0x74] ss:$8 sps:$4 sm:$0xff]   ;;  %v866_v30 = vld [vmem:[#allocation2 + $0x70] ss:$8 sps:$4 sm:$0xff]  }
  0x2f   :  { %371 = vmatpush1.bf16.msra.mxu1 %v848_v17  ;;  %v867_v31 = vld [vmem:[#allocation2 + $0x84] ss:$8 sps:$4 sm:$0xff]   ;;  %v869_v32 = vld [vmem:[#allocation2 + $0x80] ss:$8 sps:$4 sm:$0xff]   ;;  %v870_v33 = vld [vmem:[#allocation2 + $0x94] ss:$8 sps:$4 sm:$0xff]  }
  0x30   :  { %372 = vmatprep.subr.bf16.mxu1 %v849_v18  ;;  %v872_v34 = vld [vmem:[#allocation2 + $0x90] ss:$8 sps:$4 sm:$0xff]   ;;  %v873_v35 = vld [vmem:[#allocation2 + $0xa4] ss:$8 sps:$4 sm:$0xff]   ;;  %v875_v36 = vld [vmem:[#allocation2 + $0xa0] ss:$8 sps:$4 sm:$0xff]  }
  0x31   :  { %124 = vmatpush1.bf16.msra.mxu0 %v114_v16  ;;  %v876_v37 = vld [vmem:[#allocation2 + $0xb4] ss:$8 sps:$4 sm:$0xff]   ;;  %v878_v38 = vld [vmem:[#allocation2 + $0xb0] ss:$8 sps:$4 sm:$0xff]   ;;  %v879_v39 = vld [vmem:[#allocation2 + $0xc4] ss:$8 sps:$4 sm:$0xff]  }
  0x32   :  { %v881_v40 = vld [vmem:[#allocation2 + $0xc0] ss:$8 sps:$4 sm:$0xff]   ;;  %v882_v41 = vld [vmem:[#allocation2 + $0xd4] ss:$8 sps:$4 sm:$0xff]   ;;  %v884_v42 = vld [vmem:[#allocation2 + $0xd0] ss:$8 sps:$4 sm:$0xff]  }
  0x33   :  { %373 = vmatpush1.bf16.msra.mxu1 %v851_v20  ;;  %v885_v43 = vld [vmem:[#allocation2 + $0xe4] ss:$8 sps:$4 sm:$0xff]   ;;  %v887_v44 = vld [vmem:[#allocation2 + $0xe0] ss:$8 sps:$4 sm:$0xff]   ;;  %v888_v45 = vld [vmem:[#allocation2 + $0xf4] ss:$8 sps:$4 sm:$0xff]  }
  0x34   :  { %715 = vmatmul.mubr.msk.bf16.vlgmr.msra.gmra.mrb[0].mxu0 %vm105_vm2, %v62_v19  ;;  %374 = vmatprep.subr.bf16.mxu1 %v852_v21  ;;  %v890_v46 = vld [vmem:[#allocation2 + $0xf0] ss:$8 sps:$4 sm:$0xff]   ;;  %v891_v47 = vld [vmem:[#allocation4 + $0x40] sm:$0xff]   ;;  %v894_v50 = vld [vmem:[#allocation4 + $0x8] sm:$0xff]   ;;  %v72_v61 = vsub.s32 0, %v71_v60  ;;  %v76_v63 = vsub.s32 1, %v71_v60 }
  0x35   :  { %v892_v48 = vld [vmem:[#allocation4] sm:$0xff]   ;;  %774 = vmatprep.subr.bf16.mxu0 %v891_v47  ;;  %v895_v51 = vld [vmem:[#allocation4 + $0x50] sm:$0xff]   ;;  %v897_v53 = vld [vmem:[#allocation4 + $0x58] sm:$0xff]   ;;  %v971_v16 = vmov 0.0   ;;  %vm972_vm3 = vmmov 0   ;;  %vm701_vm4 = vcmask 31744  }
  0x36   :  { %775 = vmatpush3.bf16.msra.mxu0 %v892_v48  ;;  %v896_v52 = vld [vmem:[#allocation4 + $0x10] sm:$0xff]   ;;  %v898_v54 = vld [vmem:[#allocation4 + $0x18] sm:$0xff]   ;;  %v899_v55 = vld [vmem:[#allocation4 + $0x60] sm:$0xff]  }
  0x37   :  { %375 = vmatpush1.bf16.msra.mxu1 %v854_v22  ;;  %776 = vmatprep.subr.bf16.mxu0 %v893_v49  ;;  %v900_v56 = vld [vmem:[#allocation4 + $0x20] sm:$0xff]   ;;  %v901_v57 = vld [vmem:[#allocation4 + $0x68] sm:$0xff]   ;;  %v903_v12 = vld [vmem:[#allocation4 + $0x70] sm:$0xff]  }
  0x38   :  { %376 = vmatprep.subr.bf16.mxu1 %v855_v23  ;;  %v902_v58 = vld [vmem:[#allocation4 + $0x28] sm:$0xff]   ;;  %v68_v62 = vld [vmem:[%s1106_s2] sm:$0x3]  ;;  %v904_v13 = vld [vmem:[#allocation4 + $0x30] sm:$0xff]  }
  0x39   :  { %v73_v0 = vrot.slane %v68_v62, %v72_v61  ;;  %v77_v1 = vrot.slane %v68_v62, %v76_v63  ;;  %v905_v14 = vld [vmem:[#allocation4 + $0x78] sm:$0xff]   ;;  %v196_v17 = vld [vmem:[%s1108_s4] sm:$0x3] }
  0x3a   :  { %777 = vmatpush3.bf16.msra.mxu0 %v894_v50  ;;  %v906_v15 = vld [vmem:[#allocation4 + $0x38] sm:$0xff]   ;;  %v201_v18 = vrot.slane %v196_v17, %v72_v61  ;;  %v205_v19 = vrot.slane %v196_v17, %v76_v63  ;;  %v765_v47 = vld [vmem:[%s1112_s8] ss:$0 sm:$0xff] }
  0x3b   :  { %377 = vmatpush1.bf16.msra.mxu1 %v857_v24  ;;  %778 = vmatprep.subr.bf16.mxu0 %v895_v51 }
  0x3c   :  { %378 = vmatprep.subr.bf16.mxu1 %v858_v25 }
  0x3e   :  { %779 = vmatpush3.bf16.msra.mxu0 %v896_v52 }
  0x3f   :  { %379 = vmatpush1.bf16.msra.mxu1 %v860_v26  ;;  %780 = vmatprep.subr.bf16.mxu0 %v897_v53 }
  0x40   :  { %380 = vmatprep.subr.bf16.mxu1 %v861_v27 }
  0x42   :  { %781 = vmatpush3.bf16.msra.mxu0 %v898_v54 }
  0x43   :  { %381 = vmatpush1.bf16.msra.mxu1 %v863_v28  ;;  %782 = vmatprep.subr.bf16.mxu0 %v899_v55 }
  0x44   :  { %382 = vmatprep.subr.bf16.mxu1 %v864_v29  ;;  %v907_v29 = vld [vmem:[%s1111_s7] sm:$0xff]  }
  0x46   :  { %783 = vmatpush3.bf16.msra.mxu0 %v900_v56 }
  0x47   :  { %383 = vmatpush1.bf16.msra.mxu1 %v866_v30  ;;  %784 = vmatprep.subr.bf16.mxu0 %v901_v57 }
  0x48   :  { %384 = vmatprep.subr.bf16.mxu1 %v867_v31  ;;  %v908_v31 = vld [vmem:[%s1111_s7 + $0x8] sm:$0xff]  }
  0x4a   :  { %785 = vmatpush3.bf16.msra.mxu0 %v902_v58 }
  0x4b   :  { %385 = vmatpush1.bf16.msra.mxu1 %v869_v32  ;;  %786 = vmatprep.subr.bf16.mxu0 %v903_v12  ;;  %v909_v32 = vld [vmem:[%s1111_s7 + $0x10] sm:$0xff]  }
  0x4c   :  { %386 = vmatprep.subr.bf16.mxu1 %v870_v33  ;;  %v910_v33 = vld [vmem:[%s1111_s7 + $0x18] sm:$0xff]  }
  0x4e   :  { %787 = vmatpush3.bf16.msra.mxu0 %v904_v13 }
  0x4f   :  { %387 = vmatpush1.bf16.msra.mxu1 %v872_v34  ;;  %788 = vmatprep.subr.bf16.mxu0 %v905_v14  ;;  %v911_v34 = vld [vmem:[%s1111_s7 + $0x20] sm:$0xff]  }
  0x50   :  { %388 = vmatprep.subr.bf16.mxu1 %v873_v35  ;;  %v912_v35 = vld [vmem:[%s1111_s7 + $0x28] sm:$0xff]  }
  0x52   :  { %789 = vmatpush3.bf16.msra.mxu0 %v906_v15 }
  0x53   :  { %389 = vmatpush1.bf16.msra.mxu1 %v875_v36  ;;  %805 = vmatprep.subr.bf16.mxu0 %v971_v16  ;;  %v913_v36 = vld [vmem:[%s1111_s7 + $0x30] sm:$0xff]  }
  0x54   :  { %390 = vmatprep.subr.bf16.mxu1 %v876_v37  ;;  %v914_v37 = vld [vmem:[%s1111_s7 + $0x38] sm:$0xff]  }
  0x57   :  { %391 = vmatpush1.bf16.msra.mxu1 %v878_v38 }
  0x58   :  { %392 = vmatprep.subr.bf16.mxu1 %v879_v39  ;;  %v748_v39 = vld [vmem:[%s1110_s6] ss:$0 sm:$0xff] }
  0x5b   :  { %393 = vmatpush1.bf16.msra.mxu1 %v881_v40 }
  0x5c   :  { %394 = vmatprep.subr.bf16.mxu1 %v882_v41 }
  0x5f   :  { %395 = vmatpush1.bf16.msra.mxu1 %v884_v42 }
  0x60   :  { %396 = vmatprep.subr.bf16.mxu1 %v885_v43 }
  0x63   :  { %397 = vmatpush1.bf16.msra.mxu1 %v887_v44 }
  0x64   :  { %398 = vmatprep.subr.bf16.mxu1 %v888_v45 }
  0x67   :  { %399 = vmatpush1.bf16.msra.mxu1 %v890_v46 }
 0x107   :  { %v153_v2 = vpop.f32.mrb[0].mxu0 }
 0x108   :  { %v154_v3 = vadd.f32 %v153_v2, %v73_v0  ;;  %v155_v4 = vpop.f32.mrb[1].mxu0 }
 0x109   :  { %v156_v5 = vadd.f32 %v155_v4, %v77_v1  ;;  %v157_v6 = vpop.f32.mrb[2].mxu0 }
 0x10a   :  { %v160_v7 = vmax.f32 %v154_v3, 0.0  ;;  %v158_v8 = vpop.f32.mrb[3].mxu0 }
 0x10b   :  { %v161_v9 = vmax.f32 %v156_v5, 0.0 }
 0x10c   :  { %v162_v11 = vpack.c.bf16 %v160_v7, %v160_v7 }
 0x10d   :  { %v163_v10 = vpack.c.bf16 %v161_v9, %v161_v9 }
 0x10f   :  { %400 = vmatprep.mubr.bf16.mxu1 %v163_v10 }
 0x110   :  { %401 = vmatmul.mubr.bf16.vlgmr.msra.gmra.mrb[0].mxu1 %v162_v11 }
 0x1e3   :  { %v402_v20 = vpop.f32.mrb[0].mxu1 }
 0x1e4   :  { %v403_v21 = vadd.f32 %v402_v20, %v201_v18  ;;  %v404_v22 = vpop.f32.mrb[1].mxu1 }
 0x1e5   :  { %v405_v23 = vadd.f32 %v404_v22, %v205_v19  ;;  %v406_v24 = vpop.f32.mrb[2].mxu1 }
 0x1e6   :  { %v409_v25 = vmax.f32 %v403_v21, 0.0  ;;  %v407_v26 = vpop.f32.mrb[3].mxu1 }
 0x1e7   :  { %v410_v27 = vmax.f32 %v405_v23, 0.0 }
 0x1e8   :  { %v411_v30 = vpack.c.bf16 %v409_v25, %v409_v25 }
 0x1e9   :  { %v412_v28 = vpack.c.bf16 %v410_v27, %v410_v27 }
 0x1eb   :  { %580 = vmatprep.mubr.bf16.mxu0 %v412_v28 }
 0x1ec   :  { %581 = vmatmul.mubr.bf16.vlgmr.msra.gmra.mrb[4].mxu0 %v411_v30 }
 0x1ed   :  { %806 = vmatpush3.bf16.msra.mxu0 %v907_v29  ;;  %821 = vmatprep.mubr.msk.bf16.mxu0 %vm972_vm3, %v971_v16 }
 0x1ee   :  { %807 = vmatprep.subr.bf16.mxu0 %v971_v16 }
 0x1f1   :  { %808 = vmatpush3.bf16.msra.mxu0 %v908_v31 }
 0x1f2   :  { %809 = vmatprep.subr.bf16.mxu0 %v971_v16 }
 0x1f5   :  { %810 = vmatpush3.bf16.msra.mxu0 %v909_v32 }
 0x1f6   :  { %811 = vmatprep.subr.bf16.mxu0 %v971_v16 }
 0x1f9   :  { %812 = vmatpush3.bf16.msra.mxu0 %v910_v33 }
 0x1fa   :  { %813 = vmatprep.subr.bf16.mxu0 %v971_v16 }
 0x1fd   :  { %814 = vmatpush3.bf16.msra.mxu0 %v911_v34 }
 0x1fe   :  { %815 = vmatprep.subr.bf16.mxu0 %v971_v16 }
 0x201   :  { %816 = vmatpush3.bf16.msra.mxu0 %v912_v35 }
 0x202   :  { %817 = vmatprep.subr.bf16.mxu0 %v971_v16 }
 0x205   :  { %818 = vmatpush3.bf16.msra.mxu0 %v913_v36 }
 0x206   :  { %819 = vmatprep.subr.bf16.mxu0 %v971_v16 }
 0x209   :  { %820 = vmatpush3.bf16.msra.mxu0 %v914_v37 }
 0x2bf   :  { %v790_v38 = vpop.f32.mrb[4].mxu0 }
 0x2c0   :  { %v791_v40 = vpop.f32.mrb[5].mxu0 }
 0x2c1   :  { %v792_v41 = vadd.f32 %v791_v40, %v790_v38  ;;  %v793_v42 = vpop.f32.mrb[6].mxu0 }
 0x2c2   :  { %v794_v43 = vpop.f32.mrb[7].mxu0 }
 0x2c3   :  { %v583_v44 = vadd.f32 %v792_v41, %v748_v39 }
 0x2c5   :  { %v588_v45 = vmax.f32 %v583_v44, 0.0 }
 0x2c7   :  { %v589_v46 = vpack.c.bf16 %v588_v45, %v588_v45 }
 0x2c9   :  { %822 = vmatmul.mubr.bf16.vlgmr.msra.gmra.mrb[8].mxu0 %v589_v46 }
 0x39c   :  { %v695_v48 = vpop.f32.mrb[8].mxu0 }
 0x39d   :  { %v696_v49 = vadd.f32 %v765_v47, %v695_v48  ;;  %v823_v50 = vpop.f32.mrb[9].mxu0 }
 0x39e   :  { %v698_v51 = vpop.f32.mrb[10].mxu0 }
 0x39f   :  { %702 = vst.msk [vmem:[%s1113_s9] sm:$0xff] %vm701_vm4, %v696_v49  ;;  %v824_v52 = vpop.f32.mrb[11].mxu0 }
 0x3a0   :  { %707 = vsyncpa [#allocation3], 1 }
 0x3a1   :  { %708 = vsyncpa [#allocation5], 1 }

</bundles_post_ra>
